<compile_context>
chip_gen: v7x
topology: tpu7x:2x2x1
jax: 0.10.0
libtpu: 0.0.40
codegen_flags: <defaults>
</compile_context>

<pallas_src>
import functools

import jax
import jax.numpy as jnp
from jax.experimental import pallas as pl
from jax.experimental.pallas import tpu as pltpu


# ----------------------------- Pallas kernel --------------------------------


def _mixer_kernel(x_ref, *refs, num_layers, operand_dtype):
    """Single-step kernel over the lane-packed activation slab.

    x_ref : (S, G*C_in)  all B*A slabs packed along lanes: x[s, g*C + c]
    refs  = (ws_0, bs_0, wck_0, bck_0, ..., ws_{L-1}, bs_{L-1}, wck_{L-1}, bck_{L-1}, o_ref)
      ws_i  : (S_out, S_in)          spatial Linear weight, PyTorch (out,in) layout (left-mul)
      bs_i  : (S_out, 1)             spatial bias as a column (broadcast over g,c lanes)
      wck_i : (G*C_in, G*C_out)      block-diagonal kron(I_G, Wc_i^T) channel weight (right-mul)
      bck_i : (1, G*C_out)           channel bias tiled over g, as a row
    """
    o_ref = refs[-1]
    p = refs[:-1]
    h = x_ref[...].astype(jnp.float32)                       # (S, G*C) f32
    for i in range(num_layers):
        ws, bs, wck, bck = p[4 * i:4 * i + 4]
        # --- spatial (token) mixing, permutes removed algebraically ---
        #   relu((x^T @ Ws^T + bs)^T) == relu(Ws @ x + bs[:,None])
        h = jnp.dot(ws[...], h.astype(operand_dtype),
                    preferred_element_type=jnp.float32) + bs[...]
        h = jnp.maximum(h, 0.0)                               # ReLU always follows spatial
        # --- channel mixing, block-diagonal weight keeps the lane packing ---
        h = jnp.dot(h.astype(operand_dtype), wck[...],
                    preferred_element_type=jnp.float32) + bck[...]
        if i < num_layers - 1:                                # no ReLU after last channel layer
            h = jnp.maximum(h, 0.0)
    o_ref[...] = h.astype(o_ref.dtype)


def mlp_mixer_forward(x, spatial_w, spatial_b, channel_w, channel_b,
                      operand_dtype=jnp.bfloat16):
    """x: (B, A, hw, C_in).  Weights/biases in PyTorch nn.Linear layout (out,in)/(out,)."""
    B, A, S, C_in = x.shape
    L = len(spatial_w)
    C_out = channel_w[-1].shape[0]
    S_out = spatial_w[-1].shape[0]                 # == hw (spatial dim restored by last layer)
    G = B * A

    # Pack every (B,A) slab into the lane dimension: xp[s, g*C_in + c] = x[g, s, c].
    xp = x.reshape(G, S, C_in).transpose(1, 0, 2).reshape(S, G * C_in)

    flat_params = []
    for i in range(L):
        # Block-diagonal channel weight: out[:, g*Cout+co] = sum_c h[:, g*Cin+c] * Wc^T[c, co]
        wc_k = jnp.kron(jnp.eye(G, dtype=jnp.float32), channel_w[i].T.astype(jnp.float32))
        bc_k = jnp.tile(channel_b[i], G).reshape(1, -1)
        flat_params += [
            spatial_w[i].astype(operand_dtype),            # (S_out_i, S_in_i), left-multiplied
            spatial_b[i].reshape(-1, 1).astype(jnp.float32),   # column bias (f32 VPU work)
            wc_k.astype(operand_dtype),                    # (G*C_in_i, G*C_out_i)
            bc_k.astype(jnp.float32),                      # row bias (f32 VPU work)
        ]

    def full_spec(arr):
        nd = arr.ndim
        return pl.BlockSpec(arr.shape, lambda g, _nd=nd: (0,) * _nd)

    kernel = functools.partial(_mixer_kernel, num_layers=L, operand_dtype=operand_dtype)
    out = pl.pallas_call(
        kernel,
        out_shape=jax.ShapeDtypeStruct((S_out, G * C_out), jnp.float32),
        grid_spec=pltpu.PrefetchScalarGridSpec(
            num_scalar_prefetch=0,
            grid=(1,),                                     # single step: no per-step overhead
            in_specs=[pl.BlockSpec((S, G * C_in), lambda g: (0, 0))]
                     + [full_spec(a) for a in flat_params],
            out_specs=pl.BlockSpec((S_out, G * C_out), lambda g: (0, 0)),  # lane-dense store
        ),
        compiler_params=pltpu.CompilerParams(
            dimension_semantics=("arbitrary",),
            vmem_limit_bytes=32 * 1024 * 1024,             # fits v7x scoped default as well
        ),
    )(xp, *flat_params)

    # Unpack: out[s, g*C_out + c] -> (B, A, hw, C_out), same ordering as the packing above.
    return out.reshape(S_out, G, C_out).transpose(1, 0, 2).reshape(B, A, S_out, C_out)


# --------------------------- pure-JAX reference ------------------------------


def mlp_mixer_reference(x, spatial_w, spatial_b, channel_w, channel_b):
    """Literal translation of the PyTorch forward (permute / Linear / ReLU), f32."""
    L = len(spatial_w)
    for i in range(L):
        x = jnp.swapaxes(x, -1, -2)
        x = jax.nn.relu(x @ spatial_w[i].T + spatial_b[i])
        x = jnp.swapaxes(x, -1, -2)
        x = x @ channel_w[i].T + channel_b[i]
        if i < L - 1:
            x = jax.nn.relu(x)
    return x


# ----------------------------------- main ------------------------------------


if __name__ == "__main__":
    B, A = 2, 4                      # batch, extra leading dim -> G = 8 slabs
    hw = 16                          # spatial tokens per slab (module default 32*32; small here)
    input_dim, hidden_dim, output_dim = 16, 32, 16
    num_layers = 3

    key = jax.random.PRNGKey(0)
    k_x, k_p = jax.random.split(key)
    x = jax.random.normal(k_x, (B, A, hw, input_dim), jnp.float32)

    h = [hidden_dim] * (num_layers - 1)
    chan_io = list(zip([input_dim] + h, h + [output_dim]))   # (in, out) per channel layer
    spat_io = list(zip([hw] + h, h + [hw]))                  # (in, out) per spatial layer

    keys = jax.random.split(k_p, 4 * num_layers)
    spatial_w, spatial_b, channel_w, channel_b = [], [], [], []
    for i in range(num_layers):
        si, so = spat_io[i]
        ci, co = chan_io[i]
        spatial_w.append(0.1 * jax.random.normal(keys[4 * i + 0], (so, si), jnp.float32))
        spatial_b.append(0.05 * jax.random.normal(keys[4 * i + 1], (so,), jnp.float32))
        channel_w.append(0.1 * jax.random.normal(keys[4 * i + 2], (co, ci), jnp.float32))
        channel_b.append(0.05 * jax.random.normal(keys[4 * i + 3], (co,), jnp.float32))

    out = mlp_mixer_forward(x, spatial_w, spatial_b, channel_w, channel_b)
    jax.block_until_ready(out)

    ref = mlp_mixer_reference(x, spatial_w, spatial_b, channel_w, channel_b)
    max_err = float(jnp.max(jnp.abs(out - ref)))
    # bf16 matmul operands with f32 accumulation: tolerance loosened per review.
    assert max_err < 1e-2, f"mismatch vs reference: max abs err = {max_err}"

    print("KERNEL_OK")
</pallas_src>

<mosaic_0001>
module attributes {stable_mosaic.version = 11 : i64} {
  func.func @_mixer_kernel(%arg0: i32, %arg1: memref<16x128xf32, #tpu.memory_space<vmem>>, %arg2: memref<32x16xbf16, #tpu.memory_space<vmem>>, %arg3: memref<32x1xf32, #tpu.memory_space<vmem>>, %arg4: memref<128x256xbf16, #tpu.memory_space<vmem>>, %arg5: memref<1x256xf32, #tpu.memory_space<vmem>>, %arg6: memref<32x32xbf16, #tpu.memory_space<vmem>>, %arg7: memref<32x1xf32, #tpu.memory_space<vmem>>, %arg8: memref<256x256xbf16, #tpu.memory_space<vmem>>, %arg9: memref<1x256xf32, #tpu.memory_space<vmem>>, %arg10: memref<16x32xbf16, #tpu.memory_space<vmem>>, %arg11: memref<16x1xf32, #tpu.memory_space<vmem>>, %arg12: memref<256x128xbf16, #tpu.memory_space<vmem>>, %arg13: memref<1x128xf32, #tpu.memory_space<vmem>>, %arg14: memref<16x128xf32, #tpu.memory_space<vmem>>) attributes {dimension_semantics = [#tpu.dimension_semantics<arbitrary>], iteration_bounds = array<i64: 1>, scalar_prefetch = 0 : i64, scratch_operands = 0 : i64, tpu.core_type = #tpu.core_type<tc>, window_params = [{pipeline_mode = #tpu.pipeline_mode<synchronous>, transform_indices = @transform_0, window_bounds = array<i64: 16, 128>}, {pipeline_mode = #tpu.pipeline_mode<synchronous>, transform_indices = @transform_1, window_bounds = array<i64: 32, 16>}, {pipeline_mode = #tpu.pipeline_mode<synchronous>, transform_indices = @transform_2, window_bounds = array<i64: 32, 1>}, {pipeline_mode = #tpu.pipeline_mode<synchronous>, transform_indices = @transform_3, window_bounds = array<i64: 128, 256>}, {pipeline_mode = #tpu.pipeline_mode<synchronous>, transform_indices = @transform_4, window_bounds = array<i64: 1, 256>}, {pipeline_mode = #tpu.pipeline_mode<synchronous>, transform_indices = @transform_5, window_bounds = array<i64: 32, 32>}, {pipeline_mode = #tpu.pipeline_mode<synchronous>, transform_indices = @transform_6, window_bounds = array<i64: 32, 1>}, {pipeline_mode = #tpu.pipeline_mode<synchronous>, transform_indices = @transform_7, window_bounds = array<i64: 256, 256>}, {pipeline_mode = #tpu.pipeline_mode<synchronous>, transform_indices = @transform_8, window_bounds = array<i64: 1, 256>}, {pipeline_mode = #tpu.pipeline_mode<synchronous>, transform_indices = @transform_9, window_bounds = array<i64: 16, 32>}, {pipeline_mode = #tpu.pipeline_mode<synchronous>, transform_indices = @transform_10, window_bounds = array<i64: 16, 1>}, {pipeline_mode = #tpu.pipeline_mode<synchronous>, transform_indices = @transform_11, window_bounds = array<i64: 256, 128>}, {pipeline_mode = #tpu.pipeline_mode<synchronous>, transform_indices = @transform_12, window_bounds = array<i64: 1, 128>}, {pipeline_mode = #tpu.pipeline_mode<synchronous>, transform_indices = @transform_13, window_bounds = array<i64: 16, 128>}]} {
    %c0 = arith.constant 0 : index
    %c0_0 = arith.constant 0 : index
    %0 = vector.load %arg1[%c0, %c0_0] : memref<16x128xf32, #tpu.memory_space<vmem>>, vector<16x128xf32>
    %c0_1 = arith.constant 0 : index
    %c0_2 = arith.constant 0 : index
    %1 = vector.load %arg2[%c0_1, %c0_2] : memref<32x16xbf16, #tpu.memory_space<vmem>>, vector<32x16xbf16>
    %2 = arith.truncf %0 : vector<16x128xf32> to vector<16x128xbf16>
    %cst = arith.constant dense<0.000000e+00> : vector<32x128xf32>
    %3 = tpu.matmul %1, %2, %cst {dimension_numbers = #tpu.dot_dimension_numbers<[1], [0], [0], [1], [0, 0, 1, 1], [], []>} : vector<32x16xbf16>, vector<16x128xbf16>, vector<32x128xf32> -> vector<32x128xf32>
    %c0_3 = arith.constant 0 : index
    %c0_4 = arith.constant 0 : index
    %4 = vector.load %arg3[%c0_3, %c0_4] : memref<32x1xf32, #tpu.memory_space<vmem>>, vector<32x1xf32>
    %5 = vector.broadcast %4 : vector<32x1xf32> to vector<32x128xf32>
    %6 = arith.addf %3, %5 : vector<32x128xf32>
    %cst_5 = arith.constant 0.000000e+00 : f32
    %7 = vector.broadcast %cst_5 : f32 to vector<32x128xf32>
    %8 = arith.maximumf %6, %7 : vector<32x128xf32>
    %9 = arith.truncf %8 : vector<32x128xf32> to vector<32x128xbf16>
    %c0_6 = arith.constant 0 : index
    %c0_7 = arith.constant 0 : index
    %10 = vector.load %arg4[%c0_6, %c0_7] : memref<128x256xbf16, #tpu.memory_space<vmem>>, vector<128x256xbf16>
    %cst_8 = arith.constant dense<0.000000e+00> : vector<32x256xf32>
    %11 = tpu.matmul %9, %10, %cst_8 {dimension_numbers = #tpu.dot_dimension_numbers<[1], [0], [0], [1], [0, 0, 1, 1], [], []>} : vector<32x128xbf16>, vector<128x256xbf16>, vector<32x256xf32> -> vector<32x256xf32>
    %c0_9 = arith.constant 0 : index
    %c0_10 = arith.constant 0 : index
    %12 = vector.load %arg5[%c0_9, %c0_10] : memref<1x256xf32, #tpu.memory_space<vmem>>, vector<1x256xf32>
    %13 = vector.broadcast %12 : vector<1x256xf32> to vector<32x256xf32>
    %14 = arith.addf %11, %13 : vector<32x256xf32>
    %cst_11 = arith.constant 0.000000e+00 : f32
    %15 = vector.broadcast %cst_11 : f32 to vector<32x256xf32>
    %16 = arith.maximumf %14, %15 : vector<32x256xf32>
    %c0_12 = arith.constant 0 : index
    %c0_13 = arith.constant 0 : index
    %17 = vector.load %arg6[%c0_12, %c0_13] : memref<32x32xbf16, #tpu.memory_space<vmem>>, vector<32x32xbf16>
    %18 = arith.truncf %16 : vector<32x256xf32> to vector<32x256xbf16>
    %cst_14 = arith.constant dense<0.000000e+00> : vector<32x256xf32>
    %19 = tpu.matmul %17, %18, %cst_14 {dimension_numbers = #tpu.dot_dimension_numbers<[1], [0], [0], [1], [0, 0, 1, 1], [], []>} : vector<32x32xbf16>, vector<32x256xbf16>, vector<32x256xf32> -> vector<32x256xf32>
    %c0_15 = arith.constant 0 : index
    %c0_16 = arith.constant 0 : index
    %20 = vector.load %arg7[%c0_15, %c0_16] : memref<32x1xf32, #tpu.memory_space<vmem>>, vector<32x1xf32>
    %21 = vector.broadcast %20 : vector<32x1xf32> to vector<32x256xf32>
    %22 = arith.addf %19, %21 : vector<32x256xf32>
    %cst_17 = arith.constant 0.000000e+00 : f32
    %23 = vector.broadcast %cst_17 : f32 to vector<32x256xf32>
    %24 = arith.maximumf %22, %23 : vector<32x256xf32>
    %25 = arith.truncf %24 : vector<32x256xf32> to vector<32x256xbf16>
    %c0_18 = arith.constant 0 : index
    %c0_19 = arith.constant 0 : index
    %26 = vector.load %arg8[%c0_18, %c0_19] : memref<256x256xbf16, #tpu.memory_space<vmem>>, vector<256x256xbf16>
    %cst_20 = arith.constant dense<0.000000e+00> : vector<32x256xf32>
    %27 = tpu.matmul %25, %26, %cst_20 {dimension_numbers = #tpu.dot_dimension_numbers<[1], [0], [0], [1], [0, 0, 1, 1], [], []>} : vector<32x256xbf16>, vector<256x256xbf16>, vector<32x256xf32> -> vector<32x256xf32>
    %c0_21 = arith.constant 0 : index
    %c0_22 = arith.constant 0 : index
    %28 = vector.load %arg9[%c0_21, %c0_22] : memref<1x256xf32, #tpu.memory_space<vmem>>, vector<1x256xf32>
    %29 = vector.broadcast %28 : vector<1x256xf32> to vector<32x256xf32>
    %30 = arith.addf %27, %29 : vector<32x256xf32>
    %cst_23 = arith.constant 0.000000e+00 : f32
    %31 = vector.broadcast %cst_23 : f32 to vector<32x256xf32>
    %32 = arith.maximumf %30, %31 : vector<32x256xf32>
    %c0_24 = arith.constant 0 : index
    %c0_25 = arith.constant 0 : index
    %33 = vector.load %arg10[%c0_24, %c0_25] : memref<16x32xbf16, #tpu.memory_space<vmem>>, vector<16x32xbf16>
    %34 = arith.truncf %32 : vector<32x256xf32> to vector<32x256xbf16>
    %cst_26 = arith.constant dense<0.000000e+00> : vector<16x256xf32>
    %35 = tpu.matmul %33, %34, %cst_26 {dimension_numbers = #tpu.dot_dimension_numbers<[1], [0], [0], [1], [0, 0, 1, 1], [], []>} : vector<16x32xbf16>, vector<32x256xbf16>, vector<16x256xf32> -> vector<16x256xf32>
    %c0_27 = arith.constant 0 : index
    %c0_28 = arith.constant 0 : index
    %36 = vector.load %arg11[%c0_27, %c0_28] : memref<16x1xf32, #tpu.memory_space<vmem>>, vector<16x1xf32>
    %37 = vector.broadcast %36 : vector<16x1xf32> to vector<16x256xf32>
    %38 = arith.addf %35, %37 : vector<16x256xf32>
    %cst_29 = arith.constant 0.000000e+00 : f32
    %39 = vector.broadcast %cst_29 : f32 to vector<16x256xf32>
    %40 = arith.maximumf %38, %39 : vector<16x256xf32>
    %41 = arith.truncf %40 : vector<16x256xf32> to vector<16x256xbf16>
    %c0_30 = arith.constant 0 : index
    %c0_31 = arith.constant 0 : index
    %42 = vector.load %arg12[%c0_30, %c0_31] : memref<256x128xbf16, #tpu.memory_space<vmem>>, vector<256x128xbf16>
    %cst_32 = arith.constant dense<0.000000e+00> : vector<16x128xf32>
    %43 = tpu.matmul %41, %42, %cst_32 {dimension_numbers = #tpu.dot_dimension_numbers<[1], [0], [0], [1], [0, 0, 1, 1], [], []>} : vector<16x256xbf16>, vector<256x128xbf16>, vector<16x128xf32> -> vector<16x128xf32>
    %c0_33 = arith.constant 0 : index
    %c0_34 = arith.constant 0 : index
    %44 = vector.load %arg13[%c0_33, %c0_34] : memref<1x128xf32, #tpu.memory_space<vmem>>, vector<1x128xf32>
    %45 = vector.broadcast %44 : vector<1x128xf32> to vector<16x128xf32>
    %46 = arith.addf %43, %45 : vector<16x128xf32>
    %c0_35 = arith.constant 0 : index
    %c0_36 = arith.constant 0 : index
    %47 = vector.load %arg14[%c0_35, %c0_36] : memref<16x128xf32, #tpu.memory_space<vmem>>, vector<16x128xf32>
    tpu.vector_store %arg14[%c0_35, %c0_36], %46 {strides = array<i32>} : memref<16x128xf32, #tpu.memory_space<vmem>>, vector<16x128xf32>,
    return
  }
  func.func @transform_0(%arg0: i32) -> (i32, i32) {
    %c0_i32 = arith.constant 0 : i32
    %c0_i32_0 = arith.constant 0 : i32
    %c0_i32_1 = arith.constant 0 : i32
    return %c0_i32, %c0_i32_0 : i32, i32
  }
  func.func @transform_1(%arg0: i32) -> (i32, i32) {
    %c0_i32 = arith.constant 0 : i32
    %c0_i32_0 = arith.constant 0 : i32
    %c0_i32_1 = arith.constant 0 : i32
    return %c0_i32, %c0_i32_0 : i32, i32
  }
  func.func @transform_2(%arg0: i32) -> (i32, i32) {
    %c0_i32 = arith.constant 0 : i32
    %c0_i32_0 = arith.constant 0 : i32
    %c0_i32_1 = arith.constant 0 : i32
    return %c0_i32, %c0_i32_0 : i32, i32
  }
  func.func @transform_3(%arg0: i32) -> (i32, i32) {
    %c0_i32 = arith.constant 0 : i32
    %c0_i32_0 = arith.constant 0 : i32
    %c0_i32_1 = arith.constant 0 : i32
    return %c0_i32, %c0_i32_0 : i32, i32
  }
  func.func @transform_4(%arg0: i32) -> (i32, i32) {
    %c0_i32 = arith.constant 0 : i32
    %c0_i32_0 = arith.constant 0 : i32
    %c0_i32_1 = arith.constant 0 : i32
    return %c0_i32, %c0_i32_0 : i32, i32
  }
  func.func @transform_5(%arg0: i32) -> (i32, i32) {
    %c0_i32 = arith.constant 0 : i32
    %c0_i32_0 = arith.constant 0 : i32
    %c0_i32_1 = arith.constant 0 : i32
    return %c0_i32, %c0_i32_0 : i32, i32
  }
  func.func @transform_6(%arg0: i32) -> (i32, i32) {
    %c0_i32 = arith.constant 0 : i32
    %c0_i32_0 = arith.constant 0 : i32
    %c0_i32_1 = arith.constant 0 : i32
    return %c0_i32, %c0_i32_0 : i32, i32
  }
  func.func @transform_7(%arg0: i32) -> (i32, i32) {
    %c0_i32 = arith.constant 0 : i32
    %c0_i32_0 = arith.constant 0 : i32
    %c0_i32_1 = arith.constant 0 : i32
    return %c0_i32, %c0_i32_0 : i32, i32
  }
  func.func @transform_8(%arg0: i32) -> (i32, i32) {
    %c0_i32 = arith.constant 0 : i32
    %c0_i32_0 = arith.constant 0 : i32
    %c0_i32_1 = arith.constant 0 : i32
    return %c0_i32, %c0_i32_0 : i32, i32
  }
  func.func @transform_9(%arg0: i32) -> (i32, i32) {
    %c0_i32 = arith.constant 0 : i32
    %c0_i32_0 = arith.constant 0 : i32
    %c0_i32_1 = arith.constant 0 : i32
    return %c0_i32, %c0_i32_0 : i32, i32
  }
  func.func @transform_10(%arg0: i32) -> (i32, i32) {
    %c0_i32 = arith.constant 0 : i32
    %c0_i32_0 = arith.constant 0 : i32
    %c0_i32_1 = arith.constant 0 : i32
    return %c0_i32, %c0_i32_0 : i32, i32
  }
  func.func @transform_11(%arg0: i32) -> (i32, i32) {
    %c0_i32 = arith.constant 0 : i32
    %c0_i32_0 = arith.constant 0 : i32
    %c0_i32_1 = arith.constant 0 : i32
    return %c0_i32, %c0_i32_0 : i32, i32
  }
  func.func @transform_12(%arg0: i32) -> (i32, i32) {
    %c0_i32 = arith.constant 0 : i32
    %c0_i32_0 = arith.constant 0 : i32
    %c0_i32_1 = arith.constant 0 : i32
    return %c0_i32, %c0_i32_0 : i32, i32
  }
  func.func @transform_13(%arg0: i32) -> (i32, i32) {
    %c0_i32 = arith.constant 0 : i32
    %c0_i32_0 = arith.constant 0 : i32
    %c0_i32_1 = arith.constant 0 : i32
    return %c0_i32, %c0_i32_0 : i32, i32
  }
}

</mosaic_0001>

<bundles_post_ra>
// kernel: tpu_custom_call.1
= control target key start
LH: loop header
LB: loop body
LE: loop exit
PB: predicated region body
PF: predicated region fallthrough
CT: control target
= control target key end

     0   :  { %18 = vsyncpa [#allocation3], 0  ;;  %s1636_s0 = inlined_call_operand.vmem [shape: f32[16,128], index: 0, kind: input, shape index: {}]   ;;  %s1637_s1 = inlined_call_operand.vmem [shape: bf16[32,16], index: 1, kind: input, shape index: {}]   ;;  %s1638_s2 = inlined_call_operand.vmem [shape: f32[32,1], index: 2, kind: input, shape index: {}]   ;;  %s1639_s3 = inlined_call_operand.hbm [shape: bf16[128,256], index: 3, kind: input, shape index: {}]   ;;  %s1640_s4 = inlined_call_operand.vmem [shape: f32[1,256], index: 4, kind: input, shape index: {}]   ;;  %s1641_s5 = inlined_call_operand.hbm [shape: bf16[32,32], index: 5, kind: input, shape index: {}]   ;;  %s1642_s6 = inlined_call_operand.vmem [shape: f32[32,1], index: 6, kind: input, shape index: {}]   ;;  %s1643_s7 = inlined_call_operand.hbm [shape: bf16[256,256], index: 7, kind: input, shape index: {}]   ;;  %s1644_s8 = inlined_call_operand.vmem [shape: f32[1,256], index: 8, kind: input, shape index: {}]   ;;  %s1645_s9 = inlined_call_operand.hbm [shape: bf16[16,32], index: 9, kind: input, shape index: {}]   ;;  %s1646_s10 = inlined_call_operand.vmem [shape: f32[16,1], index: 10, kind: input, shape index: {}]   ;;  %s1647_s11 = inlined_call_operand.vmem [shape: bf16[256,128], index: 11, kind: input, shape index: {}]   ;;  %s1648_s12 = inlined_call_operand.vmem [shape: f32[1,128], index: 12, kind: input, shape index: {}]   ;;  %s1649_s13 = inlined_call_operand.hbm [shape: f32[16,128], index: 13, kind: output, shape index: {}]  }
   0x1   :  { %19 = vsyncpa [#allocation6], 0 }
   0x2   :  { %20 = vsyncpa [#allocation9], 0 }
   0x3   :  { %21 = vsyncpa [#allocation4], 0  ;;  %s1353_s25 = smov [#allocation5]   ;;  %s1235_s29 = scalar_lea.hbm %s1641_s5, 256 }
   0x4   :  { %s47_s26 = sshll.u32 %s1353_s25, 4  ;;  %p1236_p0 = scmp.ne.s32.totalorder %s1641_s5, %s1235_s29  ;;  %s48_s26 = int_to_ptr.vmem [resolvable:$true] %s47_s26 }
   0x5   :  { %p1239_p1 = scmp.lt.u32.totalorder %s1235_s29, %s1641_s5 }
   0x7   :  { %p1241_p2 = pnand %p1239_p1, %p1236_p0 }
   0x9   :  { %1244 = shalt.err (!%p1241_p2)
}
   0xa   :  { %s1245_s17 = scalar_lea.vmem %s48_s26, 256  ;;  %p1250_p4 = scmp.lt.s32.totalorder %s48_s26, %s48_s26 }
   0xb   :  { %p1246_p3 = scmp.ne.s32.totalorder %s48_s26, %s1245_s17  ;;  %p1251_p5 = scmp.lt.s32.totalorder %s1245_s17, %s1245_s17 }
   0xd   :  { %p1252_p6 = por %p1251_p5, %p1250_p4 }
   0xf   :  { %p1253_p7 = pnand %p1252_p6, %p1246_p3 }
  0x11   :  { %1256 = shalt.err (!%p1253_p7)
}
  0x12   :  { %s1354_s18 = smov 64   ;;  %s1355_s19 = smov 4  }
  0x13   :  { %53 = dma.hbm_to_vmem [thread:$0]  %s1641_s5, 256, %s48_s26, [#allocation6], %s1354_s18, %s1354_s18, %s1355_s19  }
  0x14   :  { %s1356_s22 = smov [#allocation2]   ;;  %s1257_s27 = scalar_lea.hbm %s1639_s3, 2048 }
  0x15   :  { %s33_s23 = sshll.u32 %s1356_s22, 4  ;;  %p1258_p8 = scmp.ne.s32.totalorder %s1639_s3, %s1257_s27  ;;  %s34_s23 = int_to_ptr.vmem [resolvable:$true] %s33_s23 }
  0x16   :  { %p1261_p9 = scmp.lt.u32.totalorder %s1257_s27, %s1639_s3 }
  0x18   :  { %p1263_p10 = pnand %p1261_p9, %p1258_p8 }
  0x1a   :  { %1266 = shalt.err (!%p1263_p10)
}
  0x1b   :  { %s1267_s15 = scalar_lea.vmem %s34_s23, 2048  ;;  %p1272_p12 = scmp.lt.s32.totalorder %s34_s23, %s34_s23 }
  0x1c   :  { %p1268_p11 = scmp.ne.s32.totalorder %s34_s23, %s1267_s15  ;;  %p1273_p13 = scmp.lt.s32.totalorder %s1267_s15, %s1267_s15 }
  0x1e   :  { %p1274_p0 = por %p1273_p13, %p1272_p12 }
  0x20   :  { %p1275_p1 = pnand %p1274_p0, %p1268_p11 }
  0x22   :  { %1278 = shalt.err (!%p1275_p1)
}
  0x23   :  { %s1357_s5 = smov 128   ;;  %s1358_s26 = smov 8  }
  0x24   :  { %39 = dma.hbm_to_vmem [thread:$0]  %s1639_s3, 2048, %s34_s23, [#allocation3], %s1357_s5, %s1357_s5, %s1358_s26  }
  0x25   :  { %s1359_s20 = smov [#allocation7]   ;;  %s1360_s22 = smov [#allocation8]  }
  0x26   :  { %s61_s21 = sshll.u32 %s1359_s20, 4  ;;  %s75_s24 = sshll.u32 %s1360_s22, 4  ;;  %s62_s21 = int_to_ptr.vmem [resolvable:$true] %s61_s21  ;;  %s1463_s24 = int_to_ptr.vmem [resolvable:$true] %s75_s24 }
  0x27   :  { %s1279_s28 = scalar_lea.hbm %s1643_s7, 4096 }
  0x28   :  { %p1280_p2 = scmp.ne.s32.totalorder %s1643_s7, %s1279_s28  ;;  %p1283_p3 = scmp.lt.u32.totalorder %s1279_s28, %s1643_s7 }
  0x2a   :  { %p1285_p4 = pnand %p1283_p3, %p1280_p2 }
  0x2c   :  { %1288 = shalt.err (!%p1285_p4)
}
  0x2d   :  { %s1289_s3 = scalar_lea.vmem %s62_s21, 4096  ;;  %p1294_p6 = scmp.lt.s32.totalorder %s62_s21, %s62_s21 }
  0x2e   :  { %p1290_p5 = scmp.ne.s32.totalorder %s62_s21, %s1289_s3  ;;  %p1295_p7 = scmp.lt.s32.totalorder %s1289_s3, %s1289_s3 }
  0x30   :  { %p1296_p8 = por %p1295_p7, %p1294_p6 }
  0x32   :  { %p1297_p9 = pnand %p1296_p8, %p1290_p5 }
  0x34   :  { %1300 = shalt.err (!%p1297_p9)
}
  0x35   :  { %67 = dma.hbm_to_vmem [thread:$0]  %s1643_s7, 4096, %s62_s21, [#allocation6], %s1357_s5, %s1357_s5, %s1358_s26  }
  0x36   :  { %s1301_s22 = scalar_lea.hbm %s1645_s9, 128 }
  0x37   :  { %p1302_p10 = scmp.ne.s32.totalorder %s1645_s9, %s1301_s22  ;;  %p1305_p11 = scmp.lt.u32.totalorder %s1301_s22, %s1645_s9 }
  0x39   :  { %p1307_p12 = pnand %p1305_p11, %p1302_p10 }
  0x3b   :  { %1310 = shalt.err (!%p1307_p12)
}
  0x3c   :  { %s1311_s30 = scalar_lea.vmem %s1463_s24, 128  ;;  %p1316_p0 = scmp.lt.s32.totalorder %s1463_s24, %s1463_s24 }
  0x3d   :  { %p1312_p13 = scmp.ne.s32.totalorder %s1463_s24, %s1311_s30  ;;  %p1317_p1 = scmp.lt.s32.totalorder %s1311_s30, %s1311_s30 }
  0x3f   :  { %p1318_p2 = por %p1317_p1, %p1316_p0 }
  0x41   :  { %p1319_p3 = pnand %p1318_p2, %p1312_p13 }
  0x43   :  { %1322 = shalt.err (!%p1319_p3)
}
  0x44   :  { %81 = dma.hbm_to_vmem [thread:$0]  %s1645_s9, 128, %s1463_s24, [#allocation9], %s1354_s18, %s1354_s18, %s1355_s19  }
  0x45   :  { %1345 = dma.done.wait [#allocation3], 2048  }
  0x46   :  { %1346 = vsyncadd [#allocation3], 4294965248 }
  0x47   :  { %1347 = dma.done.wait [#allocation6], 4352  }
  0x48   :  { %1348 = vsyncadd [#allocation6], 4294962944 }
  0x49   :  { %1349 = dma.done.wait [#allocation9], 128  }
  0x4a   :  { %1350 = vsyncadd [#allocation9], 4294967168  ;;  %v1361_v0 = vmov 0   ;;  %v101_v1 = vld [vmem:[%s1636_s0] sm:$0xff]  ;;  %v102_v2 = vld [vmem:[%s1636_s0 + $0x8] sm:$0xff]  ;;  %vm142_vm0 = vcmask 130048   ;;  %v222_v50 = vlaneseq }
  0x4b   :  { %1140 = vset.pattern.permute.xlu0 %v1361_v0  ;;  %1141 = vset.pattern.permute.xlu1 %v1361_v0  ;;  %v107_v3 = vpack.c.bf16 %v102_v2, %v101_v1  ;;  %v1142_v4 = vld [vmem:[%s1637_s1] sm:$0xff]   ;;  %v1143_v6 = vld [vmem:[%s1637_s1 + $0x8] sm:$0xff]   ;;  %v110_v7 = vld [vmem:[%s1638_s2 + $0x10] sm:$0xff]  ;;  %vm415_vm1 = vcmask 261120   ;;  %s1362_s25 = smov [#allocation10]  }
  0x4c   :  { %344 = vmatprep.mubr.bf16.mxu1 %v1361_v0  ;;  %v108_v5 = vld [vmem:[%s1638_s2] sm:$0xff]  ;;  %1126 = vmatprep.mubr.msk.bf16.mxu0 %vm142_vm0, %v1142_v4  ;;  %v109_v8 = vld [vmem:[%s1638_s2 + $0x8] sm:$0xff]  ;;  %v111_v9 = vld [vmem:[%s1638_s2 + $0x18] sm:$0xff]  ;;  %v1548_v51 = vshrl.u32 %v222_v50, 7  ;;  %s1010_s27 = sshll.u32 %s1362_s25, 4  ;;  %s1011_s27 = int_to_ptr.vmem [resolvable:$true] %s1010_s27 }
  0x4d   :  { %1124 = vmatprep.subr.bf16.mxu0 %v107_v3  ;;  %114 = vperm.xlu0 %1140, %v108_v5   ;;  %v1144_v10 = vld [vmem:[#allocation2 + $0x4] ss:$8 sps:$4 sm:$0xff]   ;;  %v1146_v11 = vld [vmem:[#allocation2] ss:$8 sps:$4 sm:$0xff]   ;;  %v1147_v13 = vld [vmem:[#allocation2 + $0x14] ss:$8 sps:$4 sm:$0xff]   ;;  %p1328_p5 = scmp.lt.s32.totalorder %s1011_s27, %s1011_s27 }
  0x4e   :  { %1125 = vmatpush3.bf16.msra.mxu0 %v107_v3  ;;  %124 = vperm.xlu1 %1141, %v110_v7   ;;  %v381_v12 = vld [vmem:[%s1642_s6] sm:$0xff]  ;;  %v382_v14 = vld [vmem:[%s1642_s6 + $0x8] sm:$0xff]  ;;  %v1149_v15 = vld [vmem:[#allocation2 + $0x10] ss:$8 sps:$4 sm:$0xff]   ;;  %v224_v52 = vsub.s32 0, %v1548_v51  ;;  %v228_v54 = vsub.s32 1, %v1548_v51 }
  0x4f   :  { %312 = vmatprep.subr.bf16.mxu1 %v1144_v10  ;;  %v1150_v16 = vld [vmem:[#allocation2 + $0x24] ss:$8 sps:$4 sm:$0xff]   ;;  %v383_v17 = vld [vmem:[%s1642_s6 + $0x10] sm:$0xff]  ;;  %v384_v18 = vld [vmem:[%s1642_s6 + $0x18] sm:$0xff]  ;;  %s1323_s28 = scalar_lea.vmem %s1011_s27, 256 }
  0x50   :  { %313 = vmatpush1.bf16.msra.mxu1 %v1146_v11  ;;  %v1152_v19 = vld [vmem:[#allocation2 + $0x20] ss:$8 sps:$4 sm:$0xff]   ;;  %v1153_v20 = vld [vmem:[#allocation2 + $0x34] ss:$8 sps:$4 sm:$0xff]   ;;  %v1155_v22 = vld [vmem:[#allocation2 + $0x30] ss:$8 sps:$4 sm:$0xff]   ;;  %p1324_p4 = scmp.ne.s32.totalorder %s1011_s27, %s1323_s28  ;;  %p1329_p6 = scmp.lt.s32.totalorder %s1323_s28, %s1323_s28 }
  0x51   :  { %1127 = vmatmul.mubr.msk.bf16.vlgmr.msra.gmra.mrb[0].mxu0 %vm142_vm0, %v1143_v6  ;;  %119 = vperm.xlu0 %1140, %v109_v8   ;;  %v758_v21 = vld [vmem:[%s1646_s10] sm:$0xff]  ;;  %v759_v23 = vld [vmem:[%s1646_s10 + $0x8] sm:$0xff]  ;;  %v1159_v26 = vld [vmem:[#allocation2 + $0x54] ss:$8 sps:$4 sm:$0xff]  }
  0x52   :  { %129 = vperm.xlu1 %1141, %v111_v9   ;;  %314 = vmatprep.subr.bf16.mxu1 %v1147_v13  ;;  %v1156_v24 = vld [vmem:[#allocation2 + $0x44] ss:$8 sps:$4 sm:$0xff]   ;;  %v1158_v25 = vld [vmem:[#allocation2 + $0x40] ss:$8 sps:$4 sm:$0xff]   ;;  %v1161_v27 = vld [vmem:[#allocation2 + $0x50] ss:$8 sps:$4 sm:$0xff]   ;;  %p1330_p7 = por %p1329_p6, %p1328_p5 }
  0x53   :  { %454 = vmatprep.mubr.bf16.mxu0 %v1361_v0  ;;  %v1162_v28 = vld [vmem:[#allocation2 + $0x64] ss:$8 sps:$4 sm:$0xff]   ;;  %v1164_v29 = vld [vmem:[#allocation2 + $0x60] ss:$8 sps:$4 sm:$0xff]   ;;  %v1165_v30 = vld [vmem:[#allocation2 + $0x74] ss:$8 sps:$4 sm:$0xff]  }
  0x54   :  { %315 = vmatpush1.bf16.msra.mxu1 %v1149_v15  ;;  %v1167_v31 = vld [vmem:[#allocation2 + $0x70] ss:$8 sps:$4 sm:$0xff]   ;;  %v220_v53 = vld [vmem:[%s1640_s4] sm:$0x3]  ;;  %p1331_p8 = pnand %p1330_p7, %p1324_p4 }
  0x55   :  { %387 = vperm.xlu0 %1140, %v381_v12   ;;  %316 = vmatprep.subr.bf16.mxu1 %v1150_v16  ;;  %v225_v55 = vrot.slane %v220_v53, %v224_v52  ;;  %v229_v56 = vrot.slane %v220_v53, %v228_v54  ;;  %v1209_v50 = vld [vmem:[#allocation7 + $0xd0] ss:$8 sps:$4 sm:$0xff]   ;;  %v1214_v53 = vld [vmem:[#allocation7 + $0xe4] ss:$8 sps:$4 sm:$0xff]  }
  0x56   :  { %392 = vperm.xlu1 %1141, %v382_v14  }
  0x58   :  { %317 = vmatpush1.bf16.msra.mxu1 %v1152_v19 }
  0x59   :  { %397 = vperm.xlu0 %1140, %v383_v17   ;;  %318 = vmatprep.subr.bf16.mxu1 %v1153_v20 }
  0x5a   :  { %402 = vperm.xlu1 %1141, %v384_v18  }
  0x5c   :  { %319 = vmatpush1.bf16.msra.mxu1 %v1155_v22  ;;  %v1172_v22 = vld [vmem:[#allocation7 + $0x4] ss:$8 sps:$4 sm:$0xff]  }
  0x5d   :  { %762 = vperm.xlu0 %1140, %v758_v21   ;;  %320 = vmatprep.subr.bf16.mxu1 %v1156_v24  ;;  %v1170_v24 = vld [vmem:[#allocation7] ss:$8 sps:$4 sm:$0xff]  }
  0x5e   :  { %767 = vperm.xlu1 %1141, %v759_v23   ;;  %v1168_v23 = vld [vmem:[#allocation5] sm:$0xff]  }
  0x60   :  { %321 = vmatpush1.bf16.msra.mxu1 %v1158_v25  ;;  %v1175_v25 = vld [vmem:[#allocation7 + $0x14] ss:$8 sps:$4 sm:$0xff]  }
  0x61   :  { %322 = vmatprep.subr.bf16.mxu1 %v1159_v26  ;;  %v1173_v26 = vld [vmem:[#allocation7 + $0x10] ss:$8 sps:$4 sm:$0xff]  }
  0x64   :  { %323 = vmatpush1.bf16.msra.mxu1 %v1161_v27  ;;  %v1178_v27 = vld [vmem:[#allocation7 + $0x24] ss:$8 sps:$4 sm:$0xff]  }
  0x65   :  { %324 = vmatprep.subr.bf16.mxu1 %v1162_v28  ;;  %v1169_v28 = vld [vmem:[#allocation5 + $0x8] sm:$0xff]  }
  0x68   :  { %325 = vmatpush1.bf16.msra.mxu1 %v1164_v29  ;;  %v1176_v29 = vld [vmem:[#allocation7 + $0x20] ss:$8 sps:$4 sm:$0xff]  }
  0x69   :  { %326 = vmatprep.subr.bf16.mxu1 %v1165_v30  ;;  %v1181_v30 = vld [vmem:[#allocation7 + $0x34] ss:$8 sps:$4 sm:$0xff]  }
  0x6c   :  { %327 = vmatpush1.bf16.msra.mxu1 %v1167_v31  ;;  %v1179_v31 = vld [vmem:[#allocation7 + $0x30] ss:$8 sps:$4 sm:$0xff]  }
  0xcc   :  { %v115_v33 = vpop.permute.xlu0 %114 }
  0xcd   :  { %v125_v32 = vpop.permute.xlu1 %124 }
  0xd0   :  { %v120_v40 = vpop.permute.xlu0 %119 }
  0xd1   :  { %v130_v37 = vpop.permute.xlu1 %129 }
 0x124   :  { %v1128_v34 = vpop.f32.mrb[0].mxu0 }
 0x125   :  { %v192_v35 = vadd.f32 %v1128_v34, %v125_v32  ;;  %v183_v36 = vpop.f32.mrb[1].mxu0  ;;  %v1184_v32 = vld [vmem:[#allocation7 + $0x44] ss:$8 sps:$4 sm:$0xff]   ;;  %v1187_v34 = vld [vmem:[#allocation7 + $0x54] ss:$8 sps:$4 sm:$0xff]  }
 0x126   :  { %v184_v38 = vadd.f32 %v183_v36, %v115_v33  ;;  %v1129_v39 = vpop.f32.mrb[2].mxu0  ;;  %v1182_v33 = vld [vmem:[#allocation7 + $0x40] ss:$8 sps:$4 sm:$0xff]  }
 0x127   :  { %v195_v41 = vadd.f32 %v1129_v39, %v130_v37  ;;  %v186_v42 = vpop.f32.mrb[3].mxu0  ;;  %v200_v44 = vmax.f32 %v192_v35, 0.0  ;;  %v1190_v35 = vld [vmem:[#allocation7 + $0x64] ss:$8 sps:$4 sm:$0xff]   ;;  %v1188_v36 = vld [vmem:[#allocation7 + $0x60] ss:$8 sps:$4 sm:$0xff]  }
 0x128   :  { %v187_v43 = vadd.f32 %v186_v42, %v120_v40  ;;  %v198_v46 = vmax.f32 %v184_v38, 0.0  ;;  %v1193_v37 = vld [vmem:[#allocation7 + $0x74] ss:$8 sps:$4 sm:$0xff]   ;;  %v1191_v38 = vld [vmem:[#allocation7 + $0x70] ss:$8 sps:$4 sm:$0xff]  }
 0x129   :  { %v201_v45 = vmax.f32 %v195_v41, 0.0  ;;  %v1196_v39 = vld [vmem:[#allocation7 + $0x84] ss:$8 sps:$4 sm:$0xff]   ;;  %v1194_v40 = vld [vmem:[#allocation7 + $0x80] ss:$8 sps:$4 sm:$0xff]  }
 0x12a   :  { %v199_v47 = vmax.f32 %v187_v43, 0.0  ;;  %v1199_v41 = vld [vmem:[#allocation7 + $0x94] ss:$8 sps:$4 sm:$0xff]   ;;  %v1197_v42 = vld [vmem:[#allocation7 + $0x90] ss:$8 sps:$4 sm:$0xff]  }
 0x12b   :  { %v203_v48 = vpack.c.bf16 %v201_v45, %v200_v44  ;;  %v1202_v43 = vld [vmem:[#allocation7 + $0xa4] ss:$8 sps:$4 sm:$0xff]   ;;  %v1200_v44 = vld [vmem:[#allocation7 + $0xa0] ss:$8 sps:$4 sm:$0xff]   ;;  %v1205_v45 = vld [vmem:[#allocation7 + $0xb4] ss:$8 sps:$4 sm:$0xff]  }
 0x12c   :  { %v202_v49 = vpack.c.bf16 %v199_v47, %v198_v46  ;;  %v1203_v46 = vld [vmem:[#allocation7 + $0xb0] ss:$8 sps:$4 sm:$0xff]   ;;  %v1208_v47 = vld [vmem:[#allocation7 + $0xc4] ss:$8 sps:$4 sm:$0xff]  }
 0x12e   :  { %345 = vmatmul.mubr.bf16.vlgmr.msra.gmra.mrb[0].mxu1 %v202_v49  ;;  %v1211_v49 = vld [vmem:[#allocation7 + $0xd4] ss:$8 sps:$4 sm:$0xff]  }
 0x12f   :  { %354 = vmatprep.mubr.bf16.mxu1 %v1361_v0 }
 0x136   :  { %355 = vmatmul.mubr.bf16.gmra.mrb[4].mxu1 %v203_v48  ;;  %v1206_v48 = vld [vmem:[#allocation7 + $0xc0] ss:$8 sps:$4 sm:$0xff]  }
 0x137   :  { %810 = vmatprep.mubr.bf16.mxu1 %v1361_v0 }
 0x201   :  { %v346_v57 = vpop.f32.mrb[0].mxu1 }
 0x202   :  { %v347_v58 = vadd.f32 %v346_v57, %v225_v55  ;;  %v348_v59 = vpop.f32.mrb[1].mxu1  ;;  %v1215_v57 = vld [vmem:[#allocation7 + $0xf0] ss:$8 sps:$4 sm:$0xff]  }
 0x203   :  { %v349_v60 = vadd.f32 %v348_v59, %v229_v56  ;;  %v350_v61 = vpop.f32.mrb[2].mxu1 }
 0x204   :  { %v351_v62 = vadd.f32 %v350_v61, %v225_v55  ;;  %v352_v63 = vpop.f32.mrb[3].mxu1  ;;  %v365_v2 = vmax.f32 %v347_v58, 0.0  ;;  %v388_v58 = vpop.permute.xlu0 %387 }
 0x205   :  { %v353_v1 = vadd.f32 %v352_v63, %v229_v56  ;;  %v366_v4 = vmax.f32 %v349_v60, 0.0 }
 0x206   :  { %v367_v3 = vmax.f32 %v351_v62, 0.0  ;;  %v393_v62 = vpop.permute.xlu1 %392 }
 0x207   :  { %v368_v5 = vmax.f32 %v353_v1, 0.0 }
 0x208   :  { %v377_v6 = vpack.c.bf16 %v367_v3, %v365_v2 }
 0x209   :  { %v378_v7 = vpack.c.bf16 %v368_v5, %v366_v4  ;;  %v356_v8 = vpop.f32.mrb[4].mxu1 }
 0x20a   :  { %v357_v9 = vadd.f32 %v356_v8, %v225_v55  ;;  %v358_v10 = vpop.f32.mrb[5].mxu1 }
 0x20b   :  { %v359_v11 = vadd.f32 %v358_v10, %v229_v56  ;;  %v360_v12 = vpop.f32.mrb[6].mxu1  ;;  %422 = vmatprep.subr.bf16.mxu0 %v378_v7  ;;  %v398_v10 = vpop.permute.xlu0 %397 }
 0x20c   :  { %v361_v13 = vadd.f32 %v360_v12, %v225_v55  ;;  %v362_v14 = vpop.f32.mrb[7].mxu1  ;;  %423 = vmatpush1.bf16.msra.mxu0 %v377_v6  ;;  %v369_v16 = vmax.f32 %v357_v9, 0.0  ;;  %v1212_v55 = vld [vmem:[#allocation7 + $0xe0] ss:$8 sps:$4 sm:$0xff]  }
 0x20d   :  { %v363_v15 = vadd.f32 %v362_v14, %v229_v56  ;;  %v370_v18 = vmax.f32 %v359_v11, 0.0  ;;  %v1217_v56 = vld [vmem:[#allocation7 + $0xf4] ss:$8 sps:$4 sm:$0xff]  }
 0x20e   :  { %v371_v17 = vmax.f32 %v361_v13, 0.0 }
 0x20f   :  { %v372_v19 = vmax.f32 %v363_v15, 0.0  ;;  %v403_v15 = vpop.permute.xlu1 %402 }
 0x210   :  { %v379_v20 = vpack.c.bf16 %v371_v17, %v369_v16 }
 0x211   :  { %v380_v21 = vpack.c.bf16 %v372_v19, %v370_v18 }
 0x213   :  { %424 = vmatprep.subr.bf16.mxu0 %v380_v21 }
 0x214   :  { %425 = vmatpush1.bf16.msra.mxu0 %v379_v20 }
 0x215   :  { %691 = vmatprep.subr.bf16.mxu0 %v1172_v22 }
 0x217   :  { %1046 = vmatmul.mubr.msk.bf16.vlgmr.msra.gmra.mrb[4].mxu0 %vm415_vm1, %v1168_v23 }
 0x218   :  { %464 = vmatprep.mubr.bf16.mxu0 %v1361_v0  ;;  %692 = vmatpush1.bf16.msra.mxu0 %v1170_v24  ;;  %v1185_v0 = vld [vmem:[#allocation7 + $0x50] ss:$8 sps:$4 sm:$0xff]  }
 0x219   :  { %693 = vmatprep.subr.bf16.mxu0 %v1175_v25 }
 0x21c   :  { %694 = vmatpush1.bf16.msra.mxu0 %v1173_v26 }
 0x21d   :  { %695 = vmatprep.subr.bf16.mxu0 %v1178_v27  ;;  %v519_v27 = vld [vmem:[%s1644_s8] sm:$0x3] }
 0x21f   :  { %1047 = vmatmul.mubr.msk.bf16.gmra.mrb[8].mxu0 %vm415_vm1, %v1169_v28  ;;  %v524_v28 = vrot.slane %v519_v27, %v224_v52 }
 0x220   :  { %696 = vmatpush1.bf16.msra.mxu0 %v1176_v29  ;;  %v528_v29 = vrot.slane %v519_v27, %v228_v54 }
 0x221   :  { %697 = vmatprep.subr.bf16.mxu0 %v1181_v30 }
 0x224   :  { %698 = vmatpush1.bf16.msra.mxu0 %v1179_v31 }
 0x225   :  { %699 = vmatprep.subr.bf16.mxu0 %v1184_v32 }
 0x228   :  { %700 = vmatpush1.bf16.msra.mxu0 %v1182_v33 }
 0x229   :  { %701 = vmatprep.subr.bf16.mxu0 %v1187_v34 }
 0x22c   :  { %702 = vmatpush1.bf16.msra.mxu0 %v1185_v0 }
 0x22d   :  { %703 = vmatprep.subr.bf16.mxu0 %v1190_v35 }
 0x230   :  { %704 = vmatpush1.bf16.msra.mxu0 %v1188_v36 }
 0x231   :  { %705 = vmatprep.subr.bf16.mxu0 %v1193_v37 }
 0x234   :  { %706 = vmatpush1.bf16.msra.mxu0 %v1191_v38 }
 0x235   :  { %707 = vmatprep.subr.bf16.mxu0 %v1196_v39 }
 0x238   :  { %708 = vmatpush1.bf16.msra.mxu0 %v1194_v40 }
 0x239   :  { %709 = vmatprep.subr.bf16.mxu0 %v1199_v41 }
 0x23c   :  { %710 = vmatpush1.bf16.msra.mxu0 %v1197_v42 }
 0x23d   :  { %711 = vmatprep.subr.bf16.mxu0 %v1202_v43 }
 0x240   :  { %712 = vmatpush1.bf16.msra.mxu0 %v1200_v44 }
 0x241   :  { %713 = vmatprep.subr.bf16.mxu0 %v1205_v45 }
 0x244   :  { %714 = vmatpush1.bf16.msra.mxu0 %v1203_v46 }
 0x245   :  { %715 = vmatprep.subr.bf16.mxu0 %v1208_v47 }
 0x248   :  { %716 = vmatpush1.bf16.msra.mxu0 %v1206_v48 }
 0x249   :  { %717 = vmatprep.subr.bf16.mxu0 %v1211_v49 }
 0x24c   :  { %718 = vmatpush1.bf16.msra.mxu0 %v1209_v50 }
 0x24d   :  { %719 = vmatprep.subr.bf16.mxu0 %v1214_v53 }
 0x250   :  { %720 = vmatpush1.bf16.msra.mxu0 %v1212_v55 }
 0x251   :  { %721 = vmatprep.subr.bf16.mxu0 %v1217_v56 }
 0x254   :  { %722 = vmatpush1.bf16.msra.mxu0 %v1215_v57  ;;  %v1219_v57 = vld [vmem:[%s1647_s11 + $0x40] sm:$0xff]  }
 0x2ea   :  { %v456_v59 = vpop.f32.mrb[4].mxu0 }
 0x2eb   :  { %v457_v60 = vadd.f32 %v456_v59, %v388_v58  ;;  %v458_v61 = vpop.f32.mrb[5].mxu0  ;;  %v1220_v59 = vld [vmem:[%s1647_s11] sm:$0xff]  }
 0x2ec   :  { %v459_v63 = vadd.f32 %v458_v61, %v388_v58  ;;  %v460_v1 = vpop.f32.mrb[6].mxu0  ;;  %v1218_v58 = vld [vmem:[#allocation8] sm:$0xff]   ;;  %v1222_v61 = vld [vmem:[%s1647_s11 + $0x8] sm:$0xff]  }
 0x2ed   :  { %v461_v2 = vadd.f32 %v460_v1, %v393_v62  ;;  %v462_v3 = vpop.f32.mrb[7].mxu0  ;;  %v475_v5 = vmax.f32 %v457_v60, 0.0  ;;  %v1221_v60 = vld [vmem:[%s1647_s11 + $0x48] sm:$0xff]   ;;  %v1225_v1 = vld [vmem:[%s1647_s11 + $0x58] sm:$0xff]  }
 0x2ee   :  { %v463_v4 = vadd.f32 %v462_v3, %v393_v62  ;;  %v476_v7 = vmax.f32 %v459_v63, 0.0  ;;  %v1223_v62 = vld [vmem:[%s1647_s11 + $0x50] sm:$0xff]   ;;  %v1227_v3 = vld [vmem:[%s1647_s11 + $0x60] sm:$0xff]  }
 0x2ef   :  { %v477_v6 = vmax.f32 %v461_v2, 0.0  ;;  %v1224_v63 = vld [vmem:[%s1647_s11 + $0x10] sm:$0xff]   ;;  %v1226_v2 = vld [vmem:[%s1647_s11 + $0x18] sm:$0xff]  }
 0x2f0   :  { %v478_v8 = vmax.f32 %v463_v4, 0.0  ;;  %v1228_v4 = vld [vmem:[%s1647_s11 + $0x20] sm:$0xff]  }
 0x2f1   :  { %v483_v9 = vpack.c.bf16 %v477_v6, %v475_v5  ;;  %v1229_v5 = vld [vmem:[%s1647_s11 + $0x68] sm:$0xff]  }
 0x2f2   :  { %v484_v11 = vpack.c.bf16 %v478_v8, %v476_v7  ;;  %v466_v12 = vpop.f32.mrb[8].mxu0  ;;  %v1230_v6 = vld [vmem:[%s1647_s11 + $0x28] sm:$0xff]   ;;  %v1231_v7 = vld [vmem:[%s1647_s11 + $0x70] sm:$0xff]  }
 0x2f3   :  { %v467_v13 = vadd.f32 %v466_v12, %v398_v10  ;;  %v468_v14 = vpop.f32.mrb[9].mxu0  ;;  %v1232_v8 = vld [vmem:[%s1647_s11 + $0x30] sm:$0xff]  }
 0x2f4   :  { %v469_v16 = vadd.f32 %v468_v14, %v398_v10  ;;  %v470_v17 = vpop.f32.mrb[10].mxu0  ;;  %723 = vmatprep.mubr.bf16.mxu0 %v484_v11  ;;  %v1234_v10 = vld [vmem:[%s1647_s11 + $0x38] sm:$0xff]   ;;  %v763_v11 = vpop.permute.xlu0 %762 }
 0x2f5   :  { %v471_v18 = vadd.f32 %v470_v17, %v403_v15  ;;  %v472_v19 = vpop.f32.mrb[11].mxu0  ;;  %724 = vmatmul.mubr.bf16.vlgmr.msra.gmra.mrb[12].mxu0 %v483_v9  ;;  %v479_v21 = vmax.f32 %v467_v13, 0.0  ;;  %v1233_v9 = vld [vmem:[%s1647_s11 + $0x78] sm:$0xff]  }
 0x2f6   :  { %v473_v20 = vadd.f32 %v472_v19, %v403_v15  ;;  %v480_v23 = vmax.f32 %v469_v16, 0.0  ;;  %v768_v15 = vpop.permute.xlu1 %767 }
 0x2f7   :  { %v481_v22 = vmax.f32 %v471_v18, 0.0 }
 0x2f8   :  { %v482_v24 = vmax.f32 %v473_v20, 0.0 }
 0x2f9   :  { %v485_v25 = vpack.c.bf16 %v481_v22, %v479_v21 }
 0x2fa   :  { %v486_v26 = vpack.c.bf16 %v482_v24, %v480_v23 }
 0x2fc   :  { %733 = vmatprep.mubr.bf16.mxu0 %v486_v26 }
 0x2fd   :  { %734 = vmatmul.mubr.bf16.gmra.mrb[16].mxu0 %v485_v25 }
 0x3c8   :  { %v725_v30 = vpop.f32.mrb[12].mxu0 }
 0x3c9   :  { %v726_v31 = vadd.f32 %v725_v30, %v524_v28  ;;  %v727_v32 = vpop.f32.mrb[13].mxu0 }
 0x3ca   :  { %v728_v33 = vadd.f32 %v727_v32, %v528_v29  ;;  %v729_v34 = vpop.f32.mrb[14].mxu0 }
 0x3cb   :  { %v730_v0 = vadd.f32 %v729_v34, %v524_v28  ;;  %v731_v35 = vpop.f32.mrb[15].mxu0  ;;  %v744_v37 = vmax.f32 %v726_v31, 0.0 }
 0x3cc   :  { %v732_v36 = vadd.f32 %v731_v35, %v528_v29  ;;  %v745_v39 = vmax.f32 %v728_v33, 0.0 }
 0x3cd   :  { %v746_v38 = vmax.f32 %v730_v0, 0.0 }
 0x3ce   :  { %v747_v40 = vmax.f32 %v732_v36, 0.0 }
 0x3cf   :  { %v754_v41 = vpack.c.bf16 %v746_v38, %v744_v37 }
 0x3d0   :  { %v755_v42 = vpack.c.bf16 %v747_v40, %v745_v39  ;;  %v735_v43 = vpop.f32.mrb[16].mxu0 }
 0x3d1   :  { %v736_v44 = vadd.f32 %v735_v43, %v524_v28  ;;  %v737_v52 = vpop.f32.mrb[17].mxu0 }
 0x3d2   :  { %v738_v45 = vadd.f32 %v737_v52, %v528_v29  ;;  %v739_v51 = vpop.f32.mrb[18].mxu0  ;;  %778 = vmatprep.subr.bf16.mxu1 %v755_v42 }
 0x3d3   :  { %v740_v54 = vadd.f32 %v739_v51, %v524_v28  ;;  %v741_v46 = vpop.f32.mrb[19].mxu0  ;;  %779 = vmatpush1.bf16.msra.mxu1 %v754_v41  ;;  %v748_v48 = vmax.f32 %v736_v44, 0.0  ;;  %v1082_v28 = vld [vmem:[%s1648_s12] ss:$0 sm:$0xff] }
 0x3d4   :  { %v742_v47 = vadd.f32 %v741_v46, %v528_v29  ;;  %v749_v50 = vmax.f32 %v738_v45, 0.0 }
 0x3d5   :  { %v750_v49 = vmax.f32 %v740_v54, 0.0 }
 0x3d6   :  { %v751_v53 = vmax.f32 %v742_v47, 0.0 }
 0x3d7   :  { %v756_v55 = vpack.c.bf16 %v750_v49, %v748_v48 }
 0x3d8   :  { %v757_v56 = vpack.c.bf16 %v751_v53, %v749_v50 }
 0x3da   :  { %780 = vmatprep.subr.bf16.mxu1 %v757_v56 }
 0x3db   :  { %781 = vmatpush1.bf16.msra.mxu1 %v756_v55 }
 0x3dc   :  { %1102 = vmatprep.subr.bf16.mxu1 %v1219_v57 }
 0x3de   :  { %1081 = vmatmul.mubr.msk.bf16.vlgmr.msra.gmra.mrb[8].mxu1 %vm415_vm1, %v1218_v58 }
 0x3df   :  { %1103 = vmatpush3.bf16.msra.mxu1 %v1220_v59 }
 0x3e0   :  { %1104 = vmatprep.subr.bf16.mxu1 %v1221_v60 }
 0x3e3   :  { %1105 = vmatpush3.bf16.msra.mxu1 %v1222_v61 }
 0x3e4   :  { %1106 = vmatprep.subr.bf16.mxu1 %v1223_v62 }
 0x3e7   :  { %1107 = vmatpush3.bf16.msra.mxu1 %v1224_v63 }
 0x3e8   :  { %1108 = vmatprep.subr.bf16.mxu1 %v1225_v1 }
 0x3eb   :  { %1109 = vmatpush3.bf16.msra.mxu1 %v1226_v2 }
 0x3ec   :  { %1110 = vmatprep.subr.bf16.mxu1 %v1227_v3 }
 0x3ef   :  { %1111 = vmatpush3.bf16.msra.mxu1 %v1228_v4 }
 0x3f0   :  { %1112 = vmatprep.subr.bf16.mxu1 %v1229_v5 }
 0x3f3   :  { %1113 = vmatpush3.bf16.msra.mxu1 %v1230_v6 }
 0x3f4   :  { %1114 = vmatprep.subr.bf16.mxu1 %v1231_v7 }
 0x3f7   :  { %1115 = vmatpush3.bf16.msra.mxu1 %v1232_v8 }
 0x3f8   :  { %1116 = vmatprep.subr.bf16.mxu1 %v1233_v9 }
 0x3fb   :  { %1117 = vmatpush3.bf16.msra.mxu1 %v1234_v10 }
 0x4b1   :  { %v812_v12 = vpop.f32.mrb[8].mxu1 }
 0x4b2   :  { %v813_v13 = vadd.f32 %v812_v12, %v763_v11  ;;  %v814_v14 = vpop.f32.mrb[9].mxu1 }
 0x4b3   :  { %v815_v16 = vadd.f32 %v814_v14, %v763_v11  ;;  %v816_v17 = vpop.f32.mrb[10].mxu1 }
 0x4b4   :  { %v817_v18 = vadd.f32 %v816_v17, %v768_v15  ;;  %v818_v19 = vpop.f32.mrb[11].mxu1  ;;  %v821_v21 = vmax.f32 %v813_v13, 0.0 }
 0x4b5   :  { %v819_v20 = vadd.f32 %v818_v19, %v768_v15  ;;  %v822_v23 = vmax.f32 %v815_v16, 0.0 }
 0x4b6   :  { %v823_v22 = vmax.f32 %v817_v18, 0.0 }
 0x4b7   :  { %v824_v24 = vmax.f32 %v819_v20, 0.0 }
 0x4b8   :  { %v825_v25 = vpack.c.bf16 %v823_v22, %v821_v21 }
 0x4b9   :  { %v826_v26 = vpack.c.bf16 %v824_v24, %v822_v23 }
 0x4bb   :  { %994 = vmatprep.mubr.bf16.mxu1 %v826_v26 }
 0x4bc   :  { %995 = vmatmul.mubr.bf16.vlgmr.msra.gmra.mrb[12].mxu1 %v825_v25 }
 0x58f   :  { %v1118_v27 = vpop.f32.mrb[12].mxu1 }
 0x590   :  { %v1119_v29 = vpop.f32.mrb[13].mxu1 }
 0x591   :  { %v1120_v30 = vadd.f32 %v1119_v29, %v1118_v27  ;;  %v1121_v31 = vpop.f32.mrb[14].mxu1 }
 0x592   :  { %v1122_v32 = vpop.f32.mrb[15].mxu1 }
 0x593   :  { %v997_v33 = vadd.f32 %v1120_v30, %v1082_v28  ;;  %v1123_v34 = vadd.f32 %v1122_v32, %v1121_v31 }
 0x595   :  { %1003 = vst [vmem:[#allocation10] sm:$0xff] %v997_v33  ;;  %v1000_v0 = vadd.f32 %v1123_v34, %v1082_v28 }
 0x597   :  { %1004 = vst [vmem:[#allocation10 + $0x8] sm:$0xff] %v1000_v0 }
 0x598   :  { %1334 = shalt.err (!%p1331_p8)
}
 0x599   :  { %s1335_s29 = scalar_lea.hbm %s1649_s13, 256 }
 0x59a   :  { %p1336_p9 = scmp.ne.s32.totalorder %s1649_s13, %s1335_s29  ;;  %p1339_p10 = scmp.lt.u32.totalorder %s1335_s29, %s1649_s13 }
 0x59c   :  { %p1341_p11 = pnand %p1339_p10, %p1336_p9 }
 0x59e   :  { %1344 = shalt.err (!%p1341_p11)
}
 0x59f   :  { %1016 = dma.vmem_to_hbm [thread:$0]  %s1011_s27, 256, %s1649_s13, [#allocation4], %s1357_s5, %s1357_s5, %s1358_s26  }
 0x5a0   :  { %1351 = dma.done.wait [#allocation4], 256  }
 0x5a1   :  { %1352 = vsyncadd [#allocation4], 4294967040 }
 0x5a2   :  { %1020 = vsyncpa [#allocation3], 1 }
 0x5a3   :  { %1021 = vsyncpa [#allocation6], 1 }
 0x5a4   :  { %1022 = vsyncpa [#allocation9], 1 }
 0x5a5   :  { %1023 = vsyncpa [#allocation4], 1 }

</bundles_post_ra>
